<compile_context>
chip_gen: v5e
topology: v5e:2x2
jax: 0.10.0
libtpu: 0.0.40
codegen_flags: <defaults>
</compile_context>

<pallas_src>
import functools

import jax
import jax.numpy as jnp
import numpy as np
from jax import lax
from jax.experimental import pallas as pl
from jax.experimental.pallas import tpu as pltpu


def _row_block(n, max_blk=512):
    """Row-block size for the parallel matmul kernels (divides n, multiple of 8)."""
    if n <= max_blk:
        return n
    for blk in (512, 256, 128, 64, 32, 16, 8):
        if blk <= max_blk and n % blk == 0:
            return blk
    return n  # fall back to a single full block


def _time_block(T, max_blk=32):
    """Largest divisor of T that is <= max_blk (timesteps per grid step)."""
    for blk in range(min(T, max_blk), 0, -1):
        if T % blk == 0:
            return blk
    return 1


# ---------------- Kernel 1: batched input projection ----------------
def _proj_kernel(x_ref, wi_ref, bi_ref, gi_ref):
    gi_ref[...] = (
        jnp.dot(x_ref[...], wi_ref[...], preferred_element_type=jnp.float32)
        + bi_ref[...])


# ---------------- Kernel 2: sequential GRU recurrence ----------------
def _rec_kernel(gi_ref, wh_ref, bhn_ref, hs_ref, h_ref, *, hidden, t_blk):
    H = hidden

    @pl.when(pl.program_id(0) == 0)
    def _():
        h_ref[...] = jnp.zeros_like(h_ref)

    wh = wh_ref[...]        # (H, 3H), kept resident across the unrolled loop
    bhn = bhn_ref[...]      # (1, H)

    def step(t, h):
        gi_t = gi_ref[t]    # (B, 3H): precomputed x@W_ih + folded biases
        gh = jnp.dot(h, wh, preferred_element_type=jnp.float32)      # (B, 3H)
        r = jax.nn.sigmoid(gi_t[:, :H] + gh[:, :H])
        z = jax.nn.sigmoid(gi_t[:, H:2 * H] + gh[:, H:2 * H])
        n = jnp.tanh(gi_t[:, 2 * H:] + r * (gh[:, 2 * H:] + bhn))
        h_new = (1.0 - z) * n + z * h
        hs_ref[t] = h_new.astype(hs_ref.dtype)
        return h_new

    h_ref[...] = lax.fori_loop(0, t_blk, step, h_ref[...], unroll=True)


# ---------------- Kernel 3: Linear + Tanh head ----------------
def _head_kernel(hs_ref, wl_ref, bl_ref, y_ref):
    y = (jnp.dot(hs_ref[...], wl_ref[...], preferred_element_type=jnp.float32)
         + bl_ref[...])
    y_ref[...] = jnp.tanh(y).astype(y_ref.dtype)


def my_gru_forward(x, params, *, max_t_block=32):
    """x: (B, T, F) float32 (batch_first, like the PyTorch module)."""
    wi, wh, bi, bh, wl, bl = params
    B, T, F = x.shape
    H = wh.shape[-1]
    O = wl.shape[-1]
    TB = T * B
    G = 3 * H

    # Stack gate weights along lanes (r, z, n) and pre-fold the r/z biases.
    wi_s = jnp.concatenate([wi[0], wi[1], wi[2]], axis=-1)              # (F, 3H)
    wh_s = jnp.concatenate([wh[0], wh[1], wh[2]], axis=-1)              # (H, 3H)
    bi_f = jnp.concatenate([bi[0] + bh[0], bi[1] + bh[1], bi[2]], axis=-1)
    bh_n = bh[2]                                                        # (1, H)

    x_tm = jnp.transpose(x, (1, 0, 2)).reshape(TB, F)                   # time-major rows

    rblk = _row_block(TB)

    # TODO(synk): on v6e/v7x, cast matmul operands to bf16 (keeping f32
    # accumulation and f32 elementwise gate math) for higher MXU throughput at
    # larger H; kept f32 here so the 1e-5 reference check stays tight.

    # 1) Input projection: one big MXU matmul, row-parallel over T*B.
    gi = pl.pallas_call(
        _proj_kernel,
        out_shape=jax.ShapeDtypeStruct((TB, G), jnp.float32),
        grid_spec=pltpu.PrefetchScalarGridSpec(
            num_scalar_prefetch=0,
            grid=(TB // rblk,),
            in_specs=[
                pl.BlockSpec((rblk, F), lambda i: (i, 0)),
                pl.BlockSpec((F, G), lambda i: (0, 0)),
                pl.BlockSpec((1, G), lambda i: (0, 0)),
            ],
            out_specs=pl.BlockSpec((rblk, G), lambda i: (i, 0)),
        ),
        compiler_params=pltpu.CompilerParams(
            dimension_semantics=("parallel",)),
    )(x_tm, wi_s, bi_f)

    # 2) Sequential recurrence over blocks of timesteps (h in VMEM scratch).
    tblk = _time_block(T, max_t_block)
    hs = pl.pallas_call(
        functools.partial(_rec_kernel, hidden=H, t_blk=tblk),
        out_shape=jax.ShapeDtypeStruct((T, B, H), jnp.float32),
        grid_spec=pltpu.PrefetchScalarGridSpec(
            num_scalar_prefetch=0,
            grid=(T // tblk,),
            in_specs=[
                pl.BlockSpec((tblk, B, G), lambda i: (i, 0, 0)),   # precomputed gates
                pl.BlockSpec((H, G), lambda i: (0, 0)),            # W_hh stacked (r,z,n)
                pl.BlockSpec((1, H), lambda i: (0, 0)),            # b_hh of n gate
            ],
            out_specs=pl.BlockSpec((tblk, B, H), lambda i: (i, 0, 0)),
            scratch_shapes=[pltpu.VMEM((B, H), jnp.float32)],      # recurrent h
        ),
        compiler_params=pltpu.CompilerParams(
            dimension_semantics=("arbitrary",)),                   # time recurrence
    )(gi.reshape(T, B, G), wh_s, bh_n)

    # 3) Linear + Tanh head: one (T*B, H) x (H, O) matmul, row-parallel.
    y = pl.pallas_call(
        _head_kernel,
        out_shape=jax.ShapeDtypeStruct((TB, O), jnp.float32),
        grid_spec=pltpu.PrefetchScalarGridSpec(
            num_scalar_prefetch=0,
            grid=(TB // rblk,),
            in_specs=[
                pl.BlockSpec((rblk, H), lambda i: (i, 0)),
                pl.BlockSpec((H, O), lambda i: (0, 0)),
                pl.BlockSpec((1, O), lambda i: (0, 0)),
            ],
            out_specs=pl.BlockSpec((rblk, O), lambda i: (i, 0)),
        ),
        compiler_params=pltpu.CompilerParams(
            dimension_semantics=("parallel",)),
    )(hs.reshape(TB, H), wl, bl)

    return jnp.transpose(y.reshape(T, B, O), (1, 0, 2))                 # (B, T, O)


def gru_reference(x, params):
    """Pure-JAX reference matching torch.nn.GRU (batch_first) + Linear + Tanh."""
    wi, wh, bi, bh, wl, bl = params
    B = x.shape[0]
    H = wh.shape[-1]

    def step(h, x_t):
        gi = jnp.einsum('bf,gfh->gbh', x_t, wi) + bi
        gh = jnp.einsum('bh,ghk->gbk', h, wh) + bh
        r = jax.nn.sigmoid(gi[0] + gh[0])
        z = jax.nn.sigmoid(gi[1] + gh[1])
        n = jnp.tanh(gi[2] + r * gh[2])
        h_new = (1.0 - z) * n + z * h
        return h_new, h_new

    h0 = jnp.zeros((B, H), jnp.float32)
    _, hs = jax.lax.scan(step, h0, jnp.transpose(x, (1, 0, 2)))
    hs = jnp.transpose(hs, (1, 0, 2))  # (B, T, H)
    return jnp.tanh(hs @ wl + bl)


def init_params(key, feat_size, hidden_size, output_size):
    """Deterministic uniform(-1/sqrt(H), 1/sqrt(H)) init, like PyTorch."""
    k = 1.0 / np.sqrt(hidden_size)
    keys = jax.random.split(key, 6)
    wi = jax.random.uniform(keys[0], (3, feat_size, hidden_size),
                            jnp.float32, -k, k)
    wh = jax.random.uniform(keys[1], (3, hidden_size, hidden_size),
                            jnp.float32, -k, k)
    bi = jax.random.uniform(keys[2], (3, 1, hidden_size), jnp.float32, -k, k)
    bh = jax.random.uniform(keys[3], (3, 1, hidden_size), jnp.float32, -k, k)
    wl = jax.random.uniform(keys[4], (hidden_size, output_size),
                            jnp.float32, -k, k)
    bl = jax.random.uniform(keys[5], (1, output_size), jnp.float32, -k, k)
    return (wi, wh, bi, bh, wl, bl)


if __name__ == "__main__":
    B, T, F, H, O = 2, 8, 8, 32, 1
    key = jax.random.PRNGKey(0)
    kx, kp = jax.random.split(key)

    x = jax.random.normal(kx, (B, T, F), jnp.float32)
    params = init_params(kp, F, H, O)

    out = my_gru_forward(x, params)
    out = jax.block_until_ready(out)

    ref = jax.block_until_ready(gru_reference(x, params))
    assert out.shape == (B, T, O), out.shape
    np.testing.assert_allclose(np.asarray(out), np.asarray(ref),
                               rtol=1e-5, atol=1e-5)
    print("KERNEL_OK")
</pallas_src>

<mosaic_0001>
module attributes {stable_mosaic.version = 11 : i64} {
  func.func @_proj_kernel(%arg0: i32, %arg1: memref<16x8xf32, #tpu.memory_space<vmem>>, %arg2: memref<8x96xf32, #tpu.memory_space<vmem>>, %arg3: memref<1x96xf32, #tpu.memory_space<vmem>>, %arg4: memref<16x96xf32, #tpu.memory_space<vmem>>) attributes {dimension_semantics = [#tpu.dimension_semantics<parallel>], iteration_bounds = array<i64: 1>, scalar_prefetch = 0 : i64, scratch_operands = 0 : i64, tpu.core_type = #tpu.core_type<tc>, window_params = [{transform_indices = @transform_0, window_bounds = array<i64: 16, 8>}, {pipeline_mode = #tpu.pipeline_mode<synchronous>, transform_indices = @transform_1, window_bounds = array<i64: 8, 96>}, {pipeline_mode = #tpu.pipeline_mode<synchronous>, transform_indices = @transform_2, window_bounds = array<i64: 1, 96>}, {transform_indices = @transform_3, window_bounds = array<i64: 16, 96>}]} {
    %c0 = arith.constant 0 : index
    %c0_0 = arith.constant 0 : index
    %0 = vector.load %arg1[%c0, %c0_0] : memref<16x8xf32, #tpu.memory_space<vmem>>, vector<16x8xf32>
    %c0_1 = arith.constant 0 : index
    %c0_2 = arith.constant 0 : index
    %1 = vector.load %arg2[%c0_1, %c0_2] : memref<8x96xf32, #tpu.memory_space<vmem>>, vector<8x96xf32>
    %cst = arith.constant dense<0.000000e+00> : vector<16x96xf32>
    %2 = tpu.matmul %0, %1, %cst {dimension_numbers = #tpu.dot_dimension_numbers<[1], [0], [0], [1], [0, 0, 1, 1], [], []>} : vector<16x8xf32>, vector<8x96xf32>, vector<16x96xf32> -> vector<16x96xf32>
    %c0_3 = arith.constant 0 : index
    %c0_4 = arith.constant 0 : index
    %3 = vector.load %arg3[%c0_3, %c0_4] : memref<1x96xf32, #tpu.memory_space<vmem>>, vector<1x96xf32>
    %4 = vector.broadcast %3 : vector<1x96xf32> to vector<16x96xf32>
    %5 = arith.addf %2, %4 : vector<16x96xf32>
    %c0_5 = arith.constant 0 : index
    %c0_6 = arith.constant 0 : index
    %6 = vector.load %arg4[%c0_5, %c0_6] : memref<16x96xf32, #tpu.memory_space<vmem>>, vector<16x96xf32>
    tpu.vector_store %arg4[%c0_5, %c0_6], %5 {strides = array<i32>} : memref<16x96xf32, #tpu.memory_space<vmem>>, vector<16x96xf32>,
    return
  }
  func.func @transform_0(%arg0: i32) -> (i32, i32) {
    %c0_i32 = arith.constant 0 : i32
    %c0_i32_0 = arith.constant 0 : i32
    return %arg0, %c0_i32 : i32, i32
  }
  func.func @transform_1(%arg0: i32) -> (i32, i32) {
    %c0_i32 = arith.constant 0 : i32
    %c0_i32_0 = arith.constant 0 : i32
    %c0_i32_1 = arith.constant 0 : i32
    return %c0_i32, %c0_i32_0 : i32, i32
  }
  func.func @transform_2(%arg0: i32) -> (i32, i32) {
    %c0_i32 = arith.constant 0 : i32
    %c0_i32_0 = arith.constant 0 : i32
    %c0_i32_1 = arith.constant 0 : i32
    return %c0_i32, %c0_i32_0 : i32, i32
  }
  func.func @transform_3(%arg0: i32) -> (i32, i32) {
    %c0_i32 = arith.constant 0 : i32
    %c0_i32_0 = arith.constant 0 : i32
    return %arg0, %c0_i32 : i32, i32
  }
}

</mosaic_0001>

<bundles_post_ra>
// kernel: tpu_custom_call.1
= control target key start
LH: loop header
LB: loop body
LE: loop exit
PB: predicated region body
PF: predicated region fallthrough
CT: control target
= control target key end

     0   :  { %vm22_vm0 = vcmask 64512   ;;  %s144_s0 = inlined_call_operand.vmem [shape: f32[16,8], index: 0, kind: input, shape index: {}]   ;;  %s145_s1 = inlined_call_operand.vmem [shape: f32[8,96], index: 1, kind: input, shape index: {}]   ;;  %s146_s2 = inlined_call_operand.vmem [shape: f32[1,96], index: 2, kind: input, shape index: {}]   ;;  %s147_s3 = inlined_call_operand.hbm [shape: f32[16,96], index: 3, kind: output, shape index: {}]  }
   0x1   :  { %v17_v0 = vld [vmem:[%s145_s1] sm:$0xff]  ;;  %v16_v2 = vld [vmem:[%s144_s0 + $0x8] sm:$0xff] }
   0x2   :  { %v15_v1 = vld [vmem:[%s144_s0] sm:$0xff]  ;;  %44 = vmatpush.msra.mxu0 %v17_v0  ;;  %75 = vmatpush.msra.mxu1 %v17_v0 }
   0x3   :  { %8 = vsyncpa [#allocation3], 0  ;;  %73 = vmatmul.msk.f32.vlgmr.msra.gmra.mxu0 %vm22_vm0, %v15_v1  ;;  %74 = vmatmul.msk.f32.vlgmr.msra.gmra.mxu1 %vm22_vm0, %v16_v2  ;;  %v79_v3 = vld [vmem:[%s146_s2] ss:$0 sm:$0xff]  ;;  %s106_s20 = smov [#allocation2]   ;;  %s61_s23 = sshll.u32 %s147_s3, 4  ;;  %s62_s23 = int_to_ptr.hbm [resolvable:$true] %s61_s23 }
   0x4   :  { %s59_s1 = sshll.u32 %s106_s20, 4  ;;  %vm52_vm1 = vcmask 785408   ;;  %s107_s0 = smov 128   ;;  %s60_s1 = int_to_ptr.vmem [resolvable:$true] %s59_s1 }
   0x5   :  { %s108_s24 = smov 8  }
  0x80   :  { %v46_v4 = vpop.f32.mrf.mxu0  ;;  %v49_v5 = vpop.f32.mrf.mxu1 }
  0x81   :  { %v47_v6 = vadd.f32 %v79_v3, %v46_v4  ;;  %v50_v7 = vadd.f32 %v79_v3, %v49_v5 }
  0x83   :  { %53 = vst.msk [vmem:[#allocation2] sm:$0xff] %vm52_vm1, %v47_v6 }
  0x84   :  { %54 = vst.msk [vmem:[#allocation2 + $0x8] sm:$0xff] %vm52_vm1, %v50_v7 }
  0x85   :  { %67 = dma.vmem_to_hbm [thread:$0]  %s60_s1, 256, %s62_s23, [#allocation3], %s107_s0, %s107_s0, %s108_s24  }
  0x86   :  { %104 = dma.done.wait [#allocation3], 256  }
  0x87   :  { %105 = vsyncadd [#allocation3], 4294967040 }
  0x88   :  { %72 = vsyncpa [#allocation3], 1 }

</bundles_post_ra>
